<compile_context>
chip_gen: v6e
topology: v6e:2x2x1
jax: 0.10.0
libtpu: 0.0.40
codegen_flags: <defaults>
</compile_context>

<pallas_src>
import jax
import jax.numpy as jnp
from jax import lax
from jax.experimental import pallas as pl
from jax.experimental.pallas import tpu as pltpu


def ca_kernel(x_ref, w1_ref, b1_ref, w2_ref, b2_ref, o_ref):
    # x_ref: (Nb, C, HW)   w1_ref: (mid, C)   b1_ref: (1, mid)
    # w2_ref: (C, mid)     b2_ref: (1, C)     o_ref: (Nb, C, HW)
    x = x_ref[...]                                            # (Nb, C, HW)

    # Global average pool over spatial dims, accumulated in f32 (bf16-safe).
    pooled = jnp.mean(x.astype(jnp.float32), axis=-1)         # (Nb, C)

    # 1x1 conv (C -> mid) + ReLU: contract channel axis against w1 (mid, C).
    y1 = lax.dot_general(
        pooled, w1_ref[...].astype(jnp.float32),
        dimension_numbers=(((1,), (1,)), ((), ())),
        preferred_element_type=jnp.float32,
    ) + b1_ref[...].astype(jnp.float32)                       # (Nb, mid)
    y1 = jnp.maximum(y1, 0.0)

    # 1x1 conv (mid -> C) + Sigmoid: contract mid axis against w2 (C, mid).
    y2 = lax.dot_general(
        y1, w2_ref[...].astype(jnp.float32),
        dimension_numbers=(((1,), (1,)), ((), ())),
        preferred_element_type=jnp.float32,
    ) + b2_ref[...].astype(jnp.float32)                       # (Nb, C)
    y2 = jax.nn.sigmoid(y2)

    # Channel-wise rescale: scale already in (Nb, C, 1) layout for lane-broadcast.
    o_ref[...] = x * y2[:, :, None].astype(x.dtype)


def _pick_batch_block(N, C, HW, itemsize, target_block_bytes=8 * 1024 * 1024):
    """Images per grid step: fill ~8 MiB blocks but keep >=2 grid steps (v7x 2 TCs)."""
    per_image = C * HW * itemsize
    nb = max(1, target_block_bytes // per_image)
    nb = min(nb, N)
    if N >= 2:
        nb = min(nb, pl.cdiv(N, 2))   # leave at least 2 parallel steps
    return int(nb)


def calayer_forward(x, w1, b1, w2, b2):
    """x: (N, C, H, W); w1: (mid, C, 1, 1); b1: (mid,); w2: (C, mid, 1, 1); b2: (C,)"""
    N, C, H, W = x.shape
    HW = H * W
    mid = w1.shape[0]

    nb = _pick_batch_block(N, C, HW, x.dtype.itemsize)
    n_steps = pl.cdiv(N, nb)
    n_pad = n_steps * nb

    xr = x.reshape(N, C, HW)
    if n_pad != N:
        xr = jnp.pad(xr, ((0, n_pad - N), (0, 0), (0, 0)))

    # Native PyTorch 1x1-conv weight layouts; no transposes needed anywhere.
    w1r = w1.reshape(mid, C)            # (mid, C)
    w2r = w2.reshape(C, mid)            # (C, mid)
    b1r = b1.reshape(1, mid)
    b2r = b2.reshape(1, C)

    # TODO(synk): for very large H*W (per-image slab >> VMEM budget) add spatial
    # tiling (two-pass pool+scale or an "arbitrary" HW grid axis with a masked-sum
    # accumulator); current whole-HW block is fine for typical CALayer sizes.
    out = pl.pallas_call(
        ca_kernel,
        out_shape=jax.ShapeDtypeStruct((n_pad, C, HW), x.dtype),
        grid=(n_steps,),
        in_specs=[
            pl.BlockSpec((nb, C, HW), lambda n: (n, 0, 0)),
            pl.BlockSpec((mid, C), lambda n: (0, 0)),
            pl.BlockSpec((1, mid), lambda n: (0, 0)),
            pl.BlockSpec((C, mid), lambda n: (0, 0)),
            pl.BlockSpec((1, C), lambda n: (0, 0)),
        ],
        out_specs=pl.BlockSpec((nb, C, HW), lambda n: (n, 0, 0)),
        compiler_params=pltpu.CompilerParams(
            dimension_semantics=("parallel",),
            vmem_limit_bytes=48 * 1024 * 1024,
        ),
    )(xr, w1r, b1r, w2r, b2r)

    if n_pad != N:
        out = out[:N]
    return out.reshape(N, C, H, W)


def reference_forward(x, w1, b1, w2, b2):
    N, C, H, W = x.shape
    mid = w1.shape[0]
    y = jnp.mean(x.astype(jnp.float32), axis=(2, 3))           # (N, C)
    y1 = jnp.maximum(y @ w1.reshape(mid, C).T + b1, 0.0)       # (N, mid)
    y2 = jax.nn.sigmoid(y1 @ w2.reshape(C, mid).T + b2)        # (N, C)
    return x * y2[:, :, None, None].astype(x.dtype)


if __name__ == "__main__":
    # Shapes: channel=32, reduction=16 -> mid=2 (matches CALayer(channel=32)).
    N, C, H, W = 2, 32, 16, 16
    reduction = 16
    mid = C // reduction

    key = jax.random.PRNGKey(0)
    kx, k1, k2, k3, k4 = jax.random.split(key, 5)
    x = jax.random.normal(kx, (N, C, H, W), dtype=jnp.float32)
    # Deterministic synthetic parameters (1x1 conv weights, PyTorch layout).
    w1 = 0.1 * jax.random.normal(k1, (mid, C, 1, 1), dtype=jnp.float32)
    b1 = 0.1 * jax.random.normal(k2, (mid,), dtype=jnp.float32)
    w2 = 0.1 * jax.random.normal(k3, (C, mid, 1, 1), dtype=jnp.float32)
    b2 = 0.1 * jax.random.normal(k4, (C,), dtype=jnp.float32)

    out = calayer_forward(x, w1, b1, w2, b2)
    out = jax.block_until_ready(out)

    ref = reference_forward(x, w1, b1, w2, b2)
    assert out.shape == (N, C, H, W)
    assert jnp.allclose(out, ref, atol=1e-5, rtol=1e-5), "mismatch vs reference"
    print("KERNEL_OK")
</pallas_src>

<mosaic_0001>
module attributes {stable_mosaic.version = 11 : i64} {
  func.func @ca_kernel(%arg0: i32, %arg1: memref<1x32x256xf32, #tpu.memory_space<vmem>>, %arg2: memref<2x32xf32, #tpu.memory_space<vmem>>, %arg3: memref<1x2xf32, #tpu.memory_space<vmem>>, %arg4: memref<32x2xf32, #tpu.memory_space<vmem>>, %arg5: memref<1x32xf32, #tpu.memory_space<vmem>>, %arg6: memref<1x32x256xf32, #tpu.memory_space<vmem>>) attributes {dimension_semantics = [#tpu.dimension_semantics<parallel>], iteration_bounds = array<i64: 2>, scalar_prefetch = 0 : i64, scratch_operands = 0 : i64, tpu.core_type = #tpu.core_type<tc>, window_params = [{transform_indices = @transform_0, window_bounds = array<i64: 1, 32, 256>}, {pipeline_mode = #tpu.pipeline_mode<synchronous>, transform_indices = @transform_1, window_bounds = array<i64: 2, 32>}, {pipeline_mode = #tpu.pipeline_mode<synchronous>, transform_indices = @transform_2, window_bounds = array<i64: 1, 2>}, {pipeline_mode = #tpu.pipeline_mode<synchronous>, transform_indices = @transform_3, window_bounds = array<i64: 32, 2>}, {pipeline_mode = #tpu.pipeline_mode<synchronous>, transform_indices = @transform_4, window_bounds = array<i64: 1, 32>}, {transform_indices = @transform_5, window_bounds = array<i64: 1, 32, 256>}]} {
    %c0 = arith.constant 0 : index
    %c0_0 = arith.constant 0 : index
    %c0_1 = arith.constant 0 : index
    %0 = vector.load %arg1[%c0, %c0_0, %c0_1] : memref<1x32x256xf32, #tpu.memory_space<vmem>>, vector<1x32x256xf32>
    %cst = arith.constant dense<0.000000e+00> : vector<1x32xf32>
    %1 = vector.multi_reduction <add>, %0, %cst [2] : vector<1x32x256xf32> to vector<1x32xf32>
    %cst_2 = arith.constant 2.560000e+02 : f32
    %2 = vector.broadcast %cst_2 : f32 to vector<1x32xf32>
    %3 = arith.divf %1, %2 : vector<1x32xf32>
    %c0_3 = arith.constant 0 : index
    %c0_4 = arith.constant 0 : index
    %4 = vector.load %arg2[%c0_3, %c0_4] : memref<2x32xf32, #tpu.memory_space<vmem>>, vector<2x32xf32>
    %cst_5 = arith.constant dense<0.000000e+00> : vector<1x2xf32>
    %5 = tpu.matmul %3, %4, %cst_5 {dimension_numbers = #tpu.dot_dimension_numbers<[1], [1], [0], [0], [0, 0, 1, 0], [], []>} : vector<1x32xf32>, vector<2x32xf32>, vector<1x2xf32> -> vector<1x2xf32>
    %c0_6 = arith.constant 0 : index
    %c0_7 = arith.constant 0 : index
    %6 = vector.load %arg3[%c0_6, %c0_7] : memref<1x2xf32, #tpu.memory_space<vmem>>, vector<1x2xf32>
    %7 = arith.addf %5, %6 : vector<1x2xf32>
    %cst_8 = arith.constant 0.000000e+00 : f32
    %8 = vector.broadcast %cst_8 : f32 to vector<1x2xf32>
    %9 = arith.maximumf %7, %8 : vector<1x2xf32>
    %c0_9 = arith.constant 0 : index
    %c0_10 = arith.constant 0 : index
    %10 = vector.load %arg4[%c0_9, %c0_10] : memref<32x2xf32, #tpu.memory_space<vmem>>, vector<32x2xf32>
    %cst_11 = arith.constant dense<0.000000e+00> : vector<1x32xf32>
    %11 = tpu.matmul %9, %10, %cst_11 {dimension_numbers = #tpu.dot_dimension_numbers<[1], [1], [0], [0], [0, 0, 1, 0], [], []>} : vector<1x2xf32>, vector<32x2xf32>, vector<1x32xf32> -> vector<1x32xf32>
    %c0_12 = arith.constant 0 : index
    %c0_13 = arith.constant 0 : index
    %12 = vector.load %arg5[%c0_12, %c0_13] : memref<1x32xf32, #tpu.memory_space<vmem>>, vector<1x32xf32>
    %13 = arith.addf %11, %12 : vector<1x32xf32>
    %14 = arith.negf %13 : vector<1x32xf32>
    %15 = math.exp %14 : vector<1x32xf32>
    %cst_14 = arith.constant 1.000000e+00 : f32
    %16 = vector.broadcast %cst_14 : f32 to vector<1x32xf32>
    %17 = arith.addf %16, %15 : vector<1x32xf32>
    %18 = arith.divf %16, %17 : vector<1x32xf32>
    %19 = vector.shape_cast %18 : vector<1x32xf32> to vector<1x32x1xf32>
    %20 = vector.broadcast %19 : vector<1x32x1xf32> to vector<1x32x256xf32>
    %21 = arith.mulf %0, %20 : vector<1x32x256xf32>
    %c0_15 = arith.constant 0 : index
    %c0_16 = arith.constant 0 : index
    %c0_17 = arith.constant 0 : index
    %22 = vector.load %arg6[%c0_15, %c0_16, %c0_17] : memref<1x32x256xf32, #tpu.memory_space<vmem>>, vector<1x32x256xf32>
    tpu.vector_store %arg6[%c0_15, %c0_16, %c0_17], %21 {strides = array<i32>} : memref<1x32x256xf32, #tpu.memory_space<vmem>>, vector<1x32x256xf32>,
    return
  }
  func.func @transform_0(%arg0: i32) -> (i32, i32, i32) {
    %c0_i32 = arith.constant 0 : i32
    %c0_i32_0 = arith.constant 0 : i32
    %c0_i32_1 = arith.constant 0 : i32
    return %arg0, %c0_i32, %c0_i32_0 : i32, i32, i32
  }
  func.func @transform_1(%arg0: i32) -> (i32, i32) {
    %c0_i32 = arith.constant 0 : i32
    %c0_i32_0 = arith.constant 0 : i32
    %c0_i32_1 = arith.constant 0 : i32
    return %c0_i32, %c0_i32_0 : i32, i32
  }
  func.func @transform_2(%arg0: i32) -> (i32, i32) {
    %c0_i32 = arith.constant 0 : i32
    %c0_i32_0 = arith.constant 0 : i32
    %c0_i32_1 = arith.constant 0 : i32
    return %c0_i32, %c0_i32_0 : i32, i32
  }
  func.func @transform_3(%arg0: i32) -> (i32, i32) {
    %c0_i32 = arith.constant 0 : i32
    %c0_i32_0 = arith.constant 0 : i32
    %c0_i32_1 = arith.constant 0 : i32
    return %c0_i32, %c0_i32_0 : i32, i32
  }
  func.func @transform_4(%arg0: i32) -> (i32, i32) {
    %c0_i32 = arith.constant 0 : i32
    %c0_i32_0 = arith.constant 0 : i32
    %c0_i32_1 = arith.constant 0 : i32
    return %c0_i32, %c0_i32_0 : i32, i32
  }
  func.func @transform_5(%arg0: i32) -> (i32, i32, i32) {
    %c0_i32 = arith.constant 0 : i32
    %c0_i32_0 = arith.constant 0 : i32
    %c0_i32_1 = arith.constant 0 : i32
    return %arg0, %c0_i32, %c0_i32_0 : i32, i32, i32
  }
}

</mosaic_0001>

<bundles_post_ra>
// kernel: tpu_custom_call.1
= control target key start
LH: loop header
LB: loop body
LE: loop exit
PB: predicated region body
PF: predicated region fallthrough
CT: control target
= control target key end

     0   :  { %10 = vsyncpa [#allocation3], 0  ;;  %s1050_s0 = inlined_call_operand.hbm [shape: f32[2,32,256], index: 0, kind: input, shape index: {}]   ;;  %s1051_s1 = inlined_call_operand.vmem [shape: f32[2,32], index: 1, kind: input, shape index: {}]   ;;  %s1052_s2 = inlined_call_operand.vmem [shape: f32[1,2], index: 2, kind: input, shape index: {}]   ;;  %s1053_s3 = inlined_call_operand.vmem [shape: f32[32,2], index: 3, kind: input, shape index: {}]   ;;  %s1054_s4 = inlined_call_operand.vmem [shape: f32[1,32], index: 4, kind: input, shape index: {}]   ;;  %s1055_s5 = inlined_call_operand.hbm [shape: f32[2,32,256], index: 5, kind: output, shape index: {}]  }
   0x1   :  { %12 = vsyncpa [#allocation3 + $0x1], 0 }
   0x2   :  { %13 = vsyncpa [#allocation4], 0 }
   0x3   :  { %15 = vsyncpa [#allocation4 + $0x1], 0  ;;  %s832_s18 = smov 0   ;;  %s834_s19 = smov 0  }
   0x4   :  { %s836_s20 = smov 0   ;;  %s838_s21 = smov 0  }
   0x5 LB: > { %s853_s22 = sadd.s32 4294967295, %s792_s21   ;;  %s597_s23 = sadd.s32 4294967294, %s792_s21   ;;  %s792_s21 = sphi %s838_s21, %s1070_s21   ;;  %s788_s20 = sphi %s836_s20, %s1069_s20   ;;  %s784_s19 = sphi %s834_s19, %s1068_s19   ;;  %s780_s18 = sphi %s832_s18, %s1067_s18  }
   0x6   : > { %s857_s24 = sadd.s32 1, %s792_s21   ;;  %s28_s25 = sadd.s32 1, %s788_s20 }
   0x7   : > { %s25_s26 = ssub.s32 %s792_s21, %s857_s24  ;;  %p35_p0 = scmp.ne.s32.totalorder %s788_s20, %s784_s19 }
   0x8   : > { %p26_p1 = scmp.eq.s32.totalorder %s25_s26, 0  ;;  %p36_p2 = scmp.eq.s32.totalorder %s792_s21, 0 }
   0x9   : > { %p41_p3 = scmp.ne.s32.totalorder %s784_s19, %s780_s18  ;;  %p42_p4 = scmp.eq.s32.totalorder %s853_s22, 0 }
   0xa   : > { %s869_s27 = scalar_select %p26_p1, %s788_s20, %s28_s25  }
   0xb   : > { %p871_p5 = por %p36_p2, %p35_p0  ;;  %p875_p6 = por %p42_p4, %p41_p3 }
   0xc   : > { %p149_p7 = scmp.eq.s32.totalorder %s853_s22, 1  ;;  %p155_p8 = scmp.eq.s32.totalorder %s597_s23, 1 }
   0xd   : > { %s1059_s29 = scalar_select %p875_p6, 1, 0 }
   0xe   : > { %p656_p10 = scmp.lt.s32.totalorder %s792_s21, 2  ;;  %p882_p11 = por %p149_p7, %p35_p0 }
   0xf   : > { %p886_p12 = por %p155_p8, %p41_p3  ;;  %s187_s7 = sand.u32 1, %s788_s20  }
  0x10   : > { %s1060_s30 = scalar_select %p882_p11, 1, 0 }
  0x11   : > { %s1061_s6 = scalar_select %p886_p12, 1, 0 }
  0x12   : > { %s619_s8 = sshll.u32 %s792_s21, 10  ;;  %s600_s9 = sshll.u32 %s187_s7, 6 }
  0x13   : > { %s895_s12 = scalar_lea.hbm %s1050_s0, %s619_s8  ;;  %s191_s13 = scalar_lea.vmem [#allocation2], %s600_s9 }
  0x14   : > { %s198_s14 = sshll.u32 %s191_s13, 4  ;;  %p899_p13 = pnand %p656_p10, %p871_p5  ;;  %s903_s14 = int_to_ptr.vmem [resolvable:$true] %s198_s14 }
  0x15   : > { %s905_s16 = scalar_lea.sflag [#allocation3], %s187_s7  ;;  %s700_s17 = scalar_lea.hbm %s895_s12, 1024 }
  0x16   : > { %p701_p0 = scmp.ne.s32.totalorder %s895_s12, %s700_s17  ;;  %p702_p1 = pneg %p899_p13 }
  0x17   : > { %s705_s26 = scalar_lea.hbm %s1050_s0, 2048  ;;  %p706_p4 = scmp.lt.s32.totalorder %s895_s12, %s1050_s0 }
  0x18   : > { %p703_p2 = pnand %p702_p1, %p701_p0  ;;  %p707_p5 = scmp.lt.s32.totalorder %s705_s26, %s700_s17 }
  0x1a   : > { %p704_p3 = pneg %p703_p2  ;;  %p708_p7 = por %p707_p5, %p706_p4 }
  0x1c   : > { %p709_p8 = pnand %p708_p7, %p704_p3 }
  0x1e   : > { %712 = shalt.err (!%p709_p8)
}
  0x1f   : > { %s713_s7 = scalar_lea.vmem %s903_s14, 1024  ;;  %s794_s9 = smov [#allocation2]  }
  0x20   : > { %p714_p10 = scmp.ne.s32.totalorder %s903_s14, %s713_s7  ;;  %s718_s10 = sshll.u32 %s794_s9, 4  ;;  %s719_s10 = int_to_ptr.vmem [resolvable:$false] %s718_s10 }
  0x21   : > { %s720_s11 = scalar_lea.vmem %s719_s10, 2048  ;;  %p721_p2 = scmp.lt.s32.totalorder %s903_s14, %s719_s10 }
  0x22   : > { %p716_p9 = pnand %p714_p10, %p702_p1  ;;  %p722_p12 = scmp.lt.s32.totalorder %s720_s11, %s713_s7 }
  0x24   : > { %p717_p0 = pneg %p716_p9  ;;  %p723_p11 = por %p722_p12, %p721_p2 }
  0x26   : > { %p724_p6 = pnand %p723_p11, %p717_p0 }
  0x28   : > { %727 = shalt.err (!%p724_p6)
}
  0x29   : > { %s795_s13 = smov 256   ;;  %s796_s17 = smov 16  }
  0x2a   : > { %651 = dma.hbm_to_vmem [thread:$0]  (!%p899_p13), %s895_s12, 1024, %s903_s14, %s905_s16, %s795_s13, %s795_s13, %s796_s17  }
  0x2b   : > { %p603_p9 = scmp.ge.s32.totalorder %s792_s21, 1  ;;  %p206_p1 = scmp.lt.s32.totalorder %s792_s21, 3 }
  0x2d   : > { %p207_p3 = pnand %p603_p9, %p206_p1 }
  0x2e   : > { %s929_s23 = sand.u32 (!%p207_p3), 1, %s784_s19   ;;  %p1063_p6 = scmp.ne.s32.totalorder (!%p207_p3), %s1059_s29, 0 }
  0x2f   : > { %210 = sbr.rel (%p207_p3) target bundleno = 770 (0x302), region = 40  ;;  %s604_s25 = sshll.u32 (!%p207_p3), %s929_s23, 6 }
  0x30   : > { %s213_s26 = scalar_lea.sflag (!%p207_p3), [#allocation3], %s929_s23  ;;  %s216_s28 = scalar_lea.vmem (!%p207_p3), [#allocation2], %s604_s25 }
  0x34   : > { %771 = dma.done.wait (%p1063_p6), %s213_s26, 1024  }
  0x35   : > { %773 = vsyncadd (%p1063_p6), %s213_s26, 4294966272  ;;  %v939_v0 = vld [vmem:[%s216_s28] sm:$0xff]  ;;  %v941_v1 = vld [vmem:[%s216_s28 + $0x8] sm:$0xff]  ;;  %v797_v12 = vmov 0.0   ;;  %vm301_vm0 = vcmask 261120   ;;  %vm798_vm1 = vmmov 0   ;;  %v274_v17 = vlaneseq }
  0x36   : > { %v943_v2 = vld [vmem:[%s216_s28 + $0x20] sm:$0xff]  ;;  %v251_v3 = vadd.f32 %v941_v1, %v939_v0  ;;  %v947_v4 = vld [vmem:[%s216_s28 + $0x28] sm:$0xff]  ;;  %v949_v5 = vld [vmem:[%s216_s28 + $0x10] sm:$0xff]  ;;  %628 = vmatprep.subr.mxu0 %v797_v12  ;;  %633 = vmatprep.subr.mxu1 %v797_v12  ;;  %vm383_vm2 = vcmask 15360   ;;  %vm285_vm3 = vcmask 130112   ;;  %vm292_vm4 = vcmask 195712  }
  0x37   : > { %v951_v6 = vld [vmem:[%s216_s28 + $0x18] sm:$0xff]  ;;  %v257_v7 = vadd.f32 %v947_v4, %v943_v2  ;;  %v955_v8 = vld [vmem:[%s216_s28 + $0x30] sm:$0xff]  ;;  %v268_v13 = vld [vmem:[%s1051_s1] sm:$0x3]  ;;  %630 = vmatprep.mubr.msk.f32.mxu0 %vm798_vm1, %v797_v12  ;;  %641 = vmatprep.mubr.msk.f32.mxu1 %vm798_vm1, %v797_v12  ;;  %v275_v18 = vand.u32 127, %v274_v17  ;;  %v277_v19 = vshrl.u32 %v274_v17, 7 }
  0x38   : > { %v957_v9 = vld [vmem:[%s216_s28 + $0x38] sm:$0xff]  ;;  %252 = vadd.xlane.f32.xlu0 %v251_v3  ;;  %v254_v10 = vadd.f32 %v951_v6, %v949_v5  ;;  %629 = vmatpush3.xpose.msk.msra.mxu0 %vm301_vm0, %v268_v13  ;;  %v380_v15 = vld [vmem:[%s1053_s3 + $0x10] sm:$0xff]  ;;  %v379_v16 = vld [vmem:[%s1053_s3 + $0x8] sm:$0xff]  ;;  %vm299_vm5 = vcmask 261312   ;;  %s242_s29 = scalar_lea.vmem [#allocation5], %s604_s25  ;;  %s620_s14 = sshll.u32 %s853_s22, 10 }
  0x39   : > { %258 = vadd.xlane.f32.xlu1 %v257_v7  ;;  %v260_v11 = vadd.f32 %v957_v9, %v955_v8  ;;  %v381_v14 = vld [vmem:[%s1053_s3 + $0x18] sm:$0xff]  ;;  %v280_v20 = vadd.s32 4294967288, %v275_v18  ;;  %v287_v22 = vadd.s32 4294967280, %v275_v18  ;;  %v294_v23 = vadd.s32 4294967272, %v275_v18  ;;  %v378_v42 = vld [vmem:[%s1053_s3] sm:$0xff]  ;;  %s524_s12 = sshll.u32 %s242_s29, 4  ;;  %s1005_s16 = scalar_lea.hbm %s1055_s5, %s620_s14  ;;  %s1000_s12 = int_to_ptr.vmem [resolvable:$true] %s524_s12 }
  0x3a   : > { %634 = vmatpush3.xpose.msk.msra.mxu1 %vm383_vm2, %v381_v14  ;;  %v278_v25 = vsub.s32 %v275_v18, %v277_v19  ;;  %v269_v43 = vld [vmem:[%s1052_s2] sm:$0x1]  ;;  %v477_v55 = vsub.s32 0, %v277_v19  ;;  %s511_s22 = scalar_lea.sflag [#allocation4], %s929_s23  ;;  %s728_s8 = scalar_lea.vmem %s1000_s12, 1024 }
  0x3b   : > { %635 = vmatprep.subr.mxu1 %v797_v12  ;;  %v283_v27 = vsub.s32 %v280_v20, %v277_v19  ;;  %v290_v28 = vsub.s32 %v287_v22, %v277_v19  ;;  %v297_v31 = vsub.s32 %v294_v23, %v277_v19  ;;  %v382_v48 = vld [vmem:[%s1054_s4] sm:$0x1]  ;;  %p729_p11 = scmp.ne.s32.totalorder %s1000_s12, %s728_s8  ;;  %p1064_p12 = scmp.ne.s32.totalorder %s1060_s30, 0 }
  0x3c   : > { %255 = vadd.xlane.f32.xlu0 %v254_v10  ;;  %s799_s7 = smov [#allocation5]  }
  0x3d   : > { %261 = vadd.xlane.f32.xlu1 %v260_v11  ;;  %p730_p13 = pnand %p729_p11, %p1064_p12  ;;  %s732_s9 = sshll.u32 %s799_s7, 4  ;;  %s733_s9 = int_to_ptr.vmem [resolvable:$false] %s732_s9 }
  0x3e   : > { %636 = vmatpush3.xpose.msk.msra.mxu1 %vm383_vm2, %v380_v15  ;;  %s734_s10 = scalar_lea.vmem %s733_s9, 2048  ;;  %p735_p5 = scmp.lt.s32.totalorder %s1000_s12, %s733_s9 }
  0x3f   : > { %637 = vmatprep.subr.mxu1 %v797_v12  ;;  %p731_p4 = pneg %p730_p13  ;;  %p736_p7 = scmp.lt.s32.totalorder %s734_s10, %s728_s8 }
  0x41   : > { %p737_p8 = por %p736_p7, %p735_p5 }
  0x42   : > { %638 = vmatpush3.xpose.msk.msra.mxu1 %vm383_vm2, %v379_v16 }
  0x43   : > { %639 = vmatprep.subr.mxu1 %v797_v12  ;;  %p738_p10 = pnand %p737_p8, %p731_p4 }
  0x46   : > { %640 = vmatpush3.xpose.msk.msra.mxu1 %vm383_vm2, %v378_v42 }
  0xc1   : > { %v253_v21 = vpop.xlane.xlu0 %252 }
  0xc2   : > { %v259_v24 = vpop.xlane.xlu1 %258  ;;  %v264_v26 = vmul.f32 0.00390625, %v253_v21 }
  0xc3   : > { %v266_v29 = vmul.f32 0.00390625, %v259_v24 }
  0xc4   : > { %v279_v35 = vrot.slane %v264_v26, %v278_v25 }
  0xc5   : > { %v256_v30 = vpop.xlane.xlu0 %255  ;;  %v291_v37 = vrot.slane %v266_v29, %v290_v28 }
  0xc6   : > { %v265_v32 = vmul.f32 0.00390625, %v256_v30  ;;  %v262_v33 = vpop.xlane.xlu1 %261 }
  0xc7   : > { %v267_v34 = vmul.f32 0.00390625, %v262_v33 }
  0xc8   : > { %v284_v36 = vrot.slane %v265_v32, %v283_v27 }
  0xc9   : > { %v298_v38 = vrot.slane %v267_v34, %v297_v31 }
  0xca   : > { %v286_v39 = vsel %vm285_vm3, %v284_v36, %v279_v35 }
  0xcb   : > { %v293_v40 = vsel %vm292_vm4, %v291_v37, %v286_v39 }
  0xcc   : > { %v300_v41 = vsel %vm299_vm5, %v298_v38, %v293_v40 }
  0xcd   : > { %631 = vmatmul.mubr.msk.f32.vlgmr.msra.gmra.mxu0 %vm301_vm0, %v300_v41 }
 0x18d   : > { %v373_v44 = vpop.f32.mrf.mxu0 }
 0x18e   : > { %v374_v45 = vadd.f32 %v373_v44, %v269_v43 }
 0x18f   : > { %v632_v46 = vpop.f32.mrf.mxu0 }
 0x190   : > { %v377_v47 = vmax.f32 %v374_v45, 0.0 }
 0x192   : > { %642 = vmatmul.mubr.msk.f32.vlgmr.msra.gmra.mxu1 %vm383_vm2, %v377_v47 }
 0x252   : > { %v465_v49 = vpop.f32.mrf.mxu1 }
 0x253   : > { %v466_v50 = vadd.f32 %v465_v49, %v382_v48 }
 0x254   : > { %v643_v51 = vpop.f32.mrf.mxu1 }
 0x255   : > { %v613_v52 = vmul.f32 -1.442695, %v466_v50 }
 0x257   : > { %696 = vpow2.f32 %v613_v52 }
 0x264   : > { %v697_v53 = vpop.eup %696 }
 0x265   : > { %v472_v54 = vadd.f32 1.0, %v697_v53 }
 0x267   : > { %698 = vrcp.f32 %v472_v54 }
 0x274   : > { %v699_v56 = vpop.eup %698 }
 0x275   : > { %v478_v57 = vrot.slane %v699_v56, %v477_v55 }
 0x277   : > { %484 = vbcast.lane.b32.xlu1 %v478_v57, 264  ;;  %480 = vbcast.lane.b32.xlu0 %v478_v57, 256 }
 0x27b   : > { %488 = vbcast.lane.b32.xlu1 %v478_v57, 272 }
 0x27f   : > { %492 = vbcast.lane.b32.xlu1 %v478_v57, 280 }
 0x2e9   : > { %v485_v58 = vpop.permute.xlu1 %484  ;;  %v481_v59 = vpop.permute.xlu0 %480 }
 0x2ea   : > { %v496_v60 = vmul.f32 %v485_v58, %v949_v5  ;;  %v497_v61 = vmul.f32 %v485_v58, %v951_v6  ;;  %v494_v62 = vmul.f32 %v481_v59, %v939_v0  ;;  %v495_v63 = vmul.f32 %v481_v59, %v941_v1 }
 0x2ec   : > { %504 = vst [vmem:[%s242_s29 + $0x10] sm:$0xff] %v496_v60  ;;  %505 = vst [vmem:[%s242_s29 + $0x18] sm:$0xff] %v497_v61 }
 0x2ed   : > { %502 = vst [vmem:[%s242_s29] sm:$0xff] %v494_v62  ;;  %503 = vst [vmem:[%s242_s29 + $0x8] sm:$0xff] %v495_v63  ;;  %v489_v3 = vpop.permute.xlu1 %488 }
 0x2ee   : > { %v498_v7 = vmul.f32 %v489_v3, %v943_v2  ;;  %v499_v5 = vmul.f32 %v489_v3, %v947_v4 }
 0x2f0   : > { %506 = vst [vmem:[%s242_s29 + $0x20] sm:$0xff] %v498_v7  ;;  %507 = vst [vmem:[%s242_s29 + $0x28] sm:$0xff] %v499_v5 }
 0x2f1   : > { %v493_v0 = vpop.permute.xlu1 %492 }
 0x2f2   : > { %v500_v1 = vmul.f32 %v493_v0, %v955_v8  ;;  %v501_v2 = vmul.f32 %v493_v0, %v957_v9 }
 0x2f4   : > { %508 = vst [vmem:[%s242_s29 + $0x30] sm:$0xff] %v500_v1  ;;  %509 = vst [vmem:[%s242_s29 + $0x38] sm:$0xff] %v501_v2 }
 0x2f5   : > { %741 = shalt.err (!%p738_p10)
}
 0x2f6   : > { %s742_s11 = scalar_lea.hbm %s1005_s16, 1024  ;;  %s746_s26 = scalar_lea.hbm %s1055_s5, 2048 }
 0x2f7   : > { %p743_p0 = scmp.ne.s32.totalorder %s1005_s16, %s742_s11  ;;  %p747_p1 = scmp.lt.s32.totalorder %s1005_s16, %s1055_s5 }
 0x2f8   : > { %p748_p3 = scmp.lt.s32.totalorder %s746_s26, %s742_s11 }
 0x2f9   : > { %p744_p2 = pnand %p743_p0, %p1064_p12 }
 0x2fa   : > { %p749_p6 = por %p748_p3, %p747_p1 }
 0x2fb   : > { %p745_p9 = pneg %p744_p2 }
 0x2fd   : > { %p750_p11 = pnand %p749_p6, %p745_p9 }
 0x2ff   : > { %753 = shalt.err (!%p750_p11)
}
 0x300   : > { %s800_s14 = smov 256   ;;  %s801_s25 = smov 16  }
 0x301   : > { %646 = dma.vmem_to_hbm [thread:$0]  (%p1064_p12), %s1000_s12, 1024, %s1005_s16, %s511_s22, %s800_s14, %s800_s14, %s801_s25  }
 0x302 PF: > { %s539_s15 = sand.u32 1, %s780_s18   ;;  %p1065_p13 = scmp.ne.s32.totalorder %s1061_s6, 0 }
 0x303   : > { %p1066_p4 = scmp.ge.s32.totalorder %s792_s21, 2  ;;  %s540_s8 = scalar_lea.sflag [#allocation4], %s539_s15 }
 0x305   : > { %p653_p5 = pnand %p1066_p4, %p1065_p13 }
 0x307   : > { %p654_p7 = pneg %p653_p5 }
 0x309   : > { %775 = dma.done.wait (%p654_p7), %s540_s8, 1024  }
 0x30a   : > { %777 = vsyncadd (%p654_p7), %s540_s8, 4294966272  ;;  %p18_p8 = scmp.ge.s32.totalorder %s857_s24, 4   ;;  %s1067_s18 = smov %s784_s19 }
 0x30b   : > { %s1068_s19 = smov %s788_s20  ;;  %s1069_s20 = smov %s869_s27 }
 0x30c   : > { %s1070_s21 = smov %s857_s24  ;;  %20 = sbr.rel (!%p18_p8) target bundleno = 5 (0x5), region = 85 }
 0x311   :  { %545 = vsyncpa [#allocation3], 1 }
 0x312   :  { %547 = vsyncpa [#allocation3 + $0x1], 1 }
 0x313   :  { %548 = vsyncpa [#allocation4], 1 }
 0x314   :  { %550 = vsyncpa [#allocation4 + $0x1], 1 }

</bundles_post_ra>
